<compile_context>
chip_gen: v5e
topology: v5e:2x2
jax: 0.10.0
libtpu: 0.0.40
codegen_flags: <defaults>
</compile_context>

<pallas_src>
import functools

import jax
import jax.numpy as jnp
from jax import lax
from jax.experimental import pallas as pl
from jax.experimental.pallas import tpu as pltpu


def _cdiv(a, b):
    return -(-a // b)


def _round_up(a, b):
    return _cdiv(a, b) * b


def _chip_info():
    """(vmem_bytes_per_core, num_tensorcores) with conservative fallbacks."""
    vmem_bytes = 64 << 20          # conservative default (v7x per-TC VMEM)
    num_tc = None
    try:
        info = pltpu.get_tpu_info()
        vmem_bytes = int(getattr(info, "vmem_capacity_bytes", vmem_bytes))
        for name in ("num_cores", "num_tensorcores", "tensorcores_per_chip",
                     "cores_per_chip"):
            v = getattr(info, name, None)
            if isinstance(v, int) and v > 0:
                num_tc = v
                break
    except Exception:
        pass
    if num_tc is None:
        # Heuristic: 64 MiB VMEM per TC => 2-TC v7x-class chip; 128 MiB => 1 TC.
        num_tc = 2 if vmem_bytes <= (64 << 20) else 1
    return vmem_bytes, num_tc


def _divnorm_kernel(x_ref, out_ref, spad_ref, *,
                    b_type, kh, kw, sigma, pc, halo_h):
    """One block of planes in the native (planes, H, W) layout.

    x_ref    : (pblk, H, W)   input planes (W on lanes, H on sublanes)
    out_ref  : (pblk, H, W)   output planes
    spad_ref : (pc, halo_h + H + ph, W + 2*pw) f32  zero-halo scratch for one
               chunk of pc planes; interior rewritten every chunk, halo zeroed
               once per grid step.
    """
    pblk, H, W = out_ref.shape
    ph, pw = kh // 2, kw // 2
    r0 = halo_h - ph                      # first scratch row the window reads
    hband = H + 2 * ph                    # padded row-band height
    Ws = W + 2 * pw

    if b_type == "linf":
        combine = jnp.maximum
    else:
        combine = lambda u, v: u + v

    # --- zero only the halo of the scratch, not the whole thing ---------------
    if ph > 0:
        spad_ref[:, r0:halo_h, :] = jnp.zeros((pc, ph, Ws), jnp.float32)
        spad_ref[:, halo_h + H:halo_h + H + ph, :] = (
            jnp.zeros((pc, ph, Ws), jnp.float32))
    if pw > 0:
        spad_ref[:, r0:r0 + hband, 0:pw] = jnp.zeros((pc, hband, pw), jnp.float32)
        spad_ref[:, r0:r0 + hband, pw + W:Ws] = (
            jnp.zeros((pc, hband, pw), jnp.float32))

    nchunks = pblk // pc

    def chunk(j, carry):
        base = pl.multiple_of(j * pc, pc)
        x = x_ref[pl.ds(base, pc), :, :].astype(jnp.float32)     # (pc, H, W)
        if b_type == "l2":
            a = x * x
        else:
            a = jnp.abs(x)

        # Magnitudes into the scratch interior (sublane-aligned row offset).
        spad_ref[:, halo_h:halo_h + H, pw:pw + W] = a

        # Separable window: horizontal (W / lane) pass over the padded band ...
        h = spad_ref[:, r0:r0 + hband, 0:W]
        for dx in range(1, kw):
            h = combine(h, spad_ref[:, r0:r0 + hband, dx:dx + W])
        # ... then vertical (H / sublane) pass on the row-reduced band.
        acc = h[:, 0:H, :]
        for dy in range(1, kh):
            acc = combine(acc, h[:, dy:dy + H, :])

        supp = jnp.sqrt(acc) if b_type == "l2" else acc
        out_ref[pl.ds(base, pc), :, :] = (x / (sigma + supp)).astype(out_ref.dtype)
        return carry

    lax.fori_loop(0, nchunks, chunk, 0, unroll=bool(nchunks <= 8))


def divisive_normalization_2d(x, b_type="linf", b_size=(5, 5), sigma=1.0):
    """Pallas implementation of DivisiveNormalization2d.forward (NCHW input)."""
    if isinstance(b_size, int):
        b_size = (b_size, b_size)
    kh, kw = int(b_size[0]), int(b_size[1])
    if kh <= 0 or kw <= 0:
        raise ValueError("b_size must be > 0")
    if kh % 2 == 0 or kw % 2 == 0:
        # Even windows change the output shape in the PyTorch module.
        raise NotImplementedError("only odd b_size is supported")
    if b_type not in ("linf", "l1", "l2"):
        raise NotImplementedError(b_type)

    N, C, H, W = x.shape
    P = N * C
    ph, pw = kh // 2, kw // 2
    halo_h = _round_up(ph, 8)             # sublane-aligned interior row offset

    itemsize = jnp.dtype(x.dtype).itemsize
    vmem_bytes, num_tc = _chip_info()
    if vmem_bytes >= (96 << 20):          # v5e / v6e: 128 MiB VMEM, 1 TC
        budget, vmem_limit = 80 << 20, 100 << 20
    else:                                 # v7x-class: 64 MiB per TC, 2 TCs
        budget, vmem_limit = 26 << 20, 52 << 20

    # Planes per in-kernel chunk: keep ~4 live f32 chunk-sized values inside
    # the 64 x 4 KiB register file.
    vregs_per_plane = _cdiv(H + 2 * ph, 8) * _cdiv(W + 2 * pw, 128)
    pc = max(1, 12 // vregs_per_plane)

    # Planes per grid block: fill the VMEM budget (double-buffered in + out,
    # counted at their (8,128)-padded VMEM footprint).  Blocks are contiguous
    # slices of the native (P,H,W) array -> fully contiguous DMA.
    bytes_per_plane = 2 * 2 * itemsize * _round_up(H, 8) * _round_up(W, 128)
    cap = max(pc, (budget // bytes_per_plane) // pc * pc)
    if num_tc >= 2 and P > pc:
        nblk = 2 * _cdiv(P, 2 * cap)      # even block count for 2-TC megacore
    else:
        nblk = _cdiv(P, cap)              # single TC: fewest, largest blocks
    pblk = _round_up(_cdiv(P, max(1, nblk)), pc)
    nblk = _cdiv(P, pblk)

    xr = x.reshape(P, H, W)               # free reshape: no HBM layout pass

    kern = functools.partial(
        _divnorm_kernel, b_type=b_type, kh=kh, kw=kw, sigma=float(sigma),
        pc=pc, halo_h=halo_h)

    out = pl.pallas_call(
        kern,
        out_shape=jax.ShapeDtypeStruct((P, H, W), x.dtype),
        grid_spec=pltpu.PrefetchScalarGridSpec(
            num_scalar_prefetch=0,
            grid=(nblk,),
            in_specs=[pl.BlockSpec((pblk, H, W), lambda i: (i, 0, 0))],
            out_specs=pl.BlockSpec((pblk, H, W), lambda i: (i, 0, 0)),
            scratch_shapes=[
                pltpu.VMEM((pc, halo_h + H + ph, W + 2 * pw), jnp.float32)],
        ),
        compiler_params=pltpu.CompilerParams(
            dimension_semantics=("parallel",),
            vmem_limit_bytes=vmem_limit,
        ),
    )(xr)

    return out.reshape(N, C, H, W)


def _reference(x, b_type, b_size, sigma):
    """Pure-JAX reference matching the PyTorch forward."""
    kh, kw = b_size
    ph, pw = kh // 2, kw // 2
    pad = ((0, 0), (0, 0), (ph, ph), (pw, pw))
    if b_type == "linf":
        supp = lax.reduce_window(
            jnp.abs(x), -jnp.inf, lax.max, (1, 1, kh, kw), (1, 1, 1, 1), pad
        )
    elif b_type == "l1":
        supp = lax.reduce_window(
            jnp.abs(x), 0.0, lax.add, (1, 1, kh, kw), (1, 1, 1, 1), pad
        )
    elif b_type == "l2":
        supp = jnp.sqrt(
            lax.reduce_window(
                x * x, 0.0, lax.add, (1, 1, kh, kw), (1, 1, 1, 1), pad
            )
        )
    else:
        raise NotImplementedError(b_type)
    return x / (sigma + supp)


if __name__ == "__main__":
    key = jax.random.PRNGKey(0)
    N, C, H, W = 2, 4, 16, 16
    x = jax.random.normal(key, (N, C, H, W), dtype=jnp.float32)

    sigma = 1.0
    b_size = (5, 5)

    ok = True
    for b_type in ("linf", "l1", "l2"):
        out = divisive_normalization_2d(x, b_type=b_type, b_size=b_size, sigma=sigma)
        out = jax.block_until_ready(out)
        ref = _reference(x, b_type, b_size, sigma)
        if not jnp.allclose(out, ref, atol=1e-5, rtol=1e-5):
            ok = False
            print(f"MISMATCH for b_type={b_type}: "
                  f"max abs err = {jnp.max(jnp.abs(out - ref))}")

    if ok:
        print("KERNEL_OK")
</pallas_src>

<mosaic_0001>
module attributes {stable_mosaic.version = 11 : i64} {
  func.func @_divnorm_kernel(%arg0: i32, %arg1: memref<4x16x16xf32, #tpu.memory_space<vmem>>, %arg2: memref<4x16x16xf32, #tpu.memory_space<vmem>>, %arg3: memref<4x26x20xf32, #tpu.memory_space<vmem>>) attributes {dimension_semantics = [#tpu.dimension_semantics<parallel>], iteration_bounds = array<i64: 2>, scalar_prefetch = 0 : i64, scratch_operands = 1 : i64, tpu.core_type = #tpu.core_type<tc>, window_params = [{transform_indices = @transform_0, window_bounds = array<i64: 4, 16, 16>}, {transform_indices = @transform_1, window_bounds = array<i64: 4, 16, 16>}]} {
    %cst = arith.constant 0.000000e+00 : f32
    %0 = vector.broadcast %cst : f32 to vector<4x2x20xf32>
    %c0 = arith.constant 0 : index
    %c6 = arith.constant 6 : index
    %c0_0 = arith.constant 0 : index
    %1 = vector.load %arg3[%c0, %c6, %c0_0] : memref<4x26x20xf32, #tpu.memory_space<vmem>>, vector<4x2x20xf32>
    tpu.vector_store %arg3[%c0, %c6, %c0_0], %0 {strides = array<i32>} : memref<4x26x20xf32, #tpu.memory_space<vmem>>, vector<4x2x20xf32>,
    %cst_1 = arith.constant 0.000000e+00 : f32
    %2 = vector.broadcast %cst_1 : f32 to vector<4x2x20xf32>
    %c0_2 = arith.constant 0 : index
    %c24 = arith.constant 24 : index
    %c0_3 = arith.constant 0 : index
    %3 = vector.load %arg3[%c0_2, %c24, %c0_3] : memref<4x26x20xf32, #tpu.memory_space<vmem>>, vector<4x2x20xf32>
    tpu.vector_store %arg3[%c0_2, %c24, %c0_3], %2 {strides = array<i32>} : memref<4x26x20xf32, #tpu.memory_space<vmem>>, vector<4x2x20xf32>,
    %cst_4 = arith.constant 0.000000e+00 : f32
    %4 = vector.broadcast %cst_4 : f32 to vector<4x20x2xf32>
    %c0_5 = arith.constant 0 : index
    %c6_6 = arith.constant 6 : index
    %c0_7 = arith.constant 0 : index
    %5 = vector.load %arg3[%c0_5, %c6_6, %c0_7] : memref<4x26x20xf32, #tpu.memory_space<vmem>>, vector<4x20x2xf32>
    tpu.vector_store %arg3[%c0_5, %c6_6, %c0_7], %4 {strides = array<i32>} : memref<4x26x20xf32, #tpu.memory_space<vmem>>, vector<4x20x2xf32>,
    %cst_8 = arith.constant 0.000000e+00 : f32
    %6 = vector.broadcast %cst_8 : f32 to vector<4x20x2xf32>
    %c0_9 = arith.constant 0 : index
    %c6_10 = arith.constant 6 : index
    %c18 = arith.constant 18 : index
    %7 = vector.load %arg3[%c0_9, %c6_10, %c18] : memref<4x26x20xf32, #tpu.memory_space<vmem>>, vector<4x20x2xf32>
    tpu.vector_store %arg3[%c0_9, %c6_10, %c18], %6 {strides = array<i32>} : memref<4x26x20xf32, #tpu.memory_space<vmem>>, vector<4x20x2xf32>,
    %c0_i32 = arith.constant 0 : i32
    %c4_i32 = arith.constant 4 : i32
    %8 = arith.muli %c0_i32, %c4_i32 : i32
    %9 = tpu.assume_multiple %8, 4 : i32
    %10 = arith.index_cast %9 : i32 to index
    %c0_11 = arith.constant 0 : index
    %c0_12 = arith.constant 0 : index
    %11 = vector.load %arg1[%10, %c0_11, %c0_12] : memref<4x16x16xf32, #tpu.memory_space<vmem>>, vector<4x16x16xf32>
    %12 = math.absf %11 : vector<4x16x16xf32>
    %c0_13 = arith.constant 0 : index
    %c8 = arith.constant 8 : index
    %c2 = arith.constant 2 : index
    %13 = vector.load %arg3[%c0_13, %c8, %c2] : memref<4x26x20xf32, #tpu.memory_space<vmem>>, vector<4x16x16xf32>
    tpu.vector_store %arg3[%c0_13, %c8, %c2], %12 {strides = array<i32>} : memref<4x26x20xf32, #tpu.memory_space<vmem>>, vector<4x16x16xf32>,
    %c0_14 = arith.constant 0 : index
    %c6_15 = arith.constant 6 : index
    %c0_16 = arith.constant 0 : index
    %14 = vector.load %arg3[%c0_14, %c6_15, %c0_16] : memref<4x26x20xf32, #tpu.memory_space<vmem>>, vector<4x20x16xf32>
    %c0_17 = arith.constant 0 : index
    %c6_18 = arith.constant 6 : index
    %c1 = arith.constant 1 : index
    %15 = vector.load %arg3[%c0_17, %c6_18, %c1] : memref<4x26x20xf32, #tpu.memory_space<vmem>>, vector<4x20x16xf32>
    %16 = arith.maximumf %14, %15 : vector<4x20x16xf32>
    %c0_19 = arith.constant 0 : index
    %c6_20 = arith.constant 6 : index
    %c2_21 = arith.constant 2 : index
    %17 = vector.load %arg3[%c0_19, %c6_20, %c2_21] : memref<4x26x20xf32, #tpu.memory_space<vmem>>, vector<4x20x16xf32>
    %18 = arith.maximumf %16, %17 : vector<4x20x16xf32>
    %c0_22 = arith.constant 0 : index
    %c6_23 = arith.constant 6 : index
    %c3 = arith.constant 3 : index
    %19 = vector.load %arg3[%c0_22, %c6_23, %c3] : memref<4x26x20xf32, #tpu.memory_space<vmem>>, vector<4x20x16xf32>
    %20 = arith.maximumf %18, %19 : vector<4x20x16xf32>
    %c0_24 = arith.constant 0 : index
    %c6_25 = arith.constant 6 : index
    %c4 = arith.constant 4 : index
    %21 = vector.load %arg3[%c0_24, %c6_25, %c4] : memref<4x26x20xf32, #tpu.memory_space<vmem>>, vector<4x20x16xf32>
    %22 = arith.maximumf %20, %21 : vector<4x20x16xf32>
    %23 = vector.extract_strided_slice %22 {offsets = [0, 0, 0], sizes = [4, 16, 16], strides = [1, 1, 1]} : vector<4x20x16xf32> to vector<4x16x16xf32>
    %24 = vector.extract_strided_slice %22 {offsets = [0, 1, 0], sizes = [4, 16, 16], strides = [1, 1, 1]} : vector<4x20x16xf32> to vector<4x16x16xf32>
    %25 = arith.maximumf %23, %24 : vector<4x16x16xf32>
    %26 = vector.extract_strided_slice %22 {offsets = [0, 2, 0], sizes = [4, 16, 16], strides = [1, 1, 1]} : vector<4x20x16xf32> to vector<4x16x16xf32>
    %27 = arith.maximumf %25, %26 : vector<4x16x16xf32>
    %28 = vector.extract_strided_slice %22 {offsets = [0, 3, 0], sizes = [4, 16, 16], strides = [1, 1, 1]} : vector<4x20x16xf32> to vector<4x16x16xf32>
    %29 = arith.maximumf %27, %28 : vector<4x16x16xf32>
    %30 = vector.extract_strided_slice %22 {offsets = [0, 4, 0], sizes = [4, 16, 16], strides = [1, 1, 1]} : vector<4x20x16xf32> to vector<4x16x16xf32>
    %31 = arith.maximumf %29, %30 : vector<4x16x16xf32>
    %cst_26 = arith.constant 1.000000e+00 : f32
    %32 = vector.broadcast %cst_26 : f32 to vector<4x16x16xf32>
    %33 = arith.addf %32, %31 : vector<4x16x16xf32>
    %34 = arith.divf %11, %33 : vector<4x16x16xf32>
    %35 = arith.index_cast %9 : i32 to index
    %c0_27 = arith.constant 0 : index
    %c0_28 = arith.constant 0 : index
    %36 = vector.load %arg2[%35, %c0_27, %c0_28] : memref<4x16x16xf32, #tpu.memory_space<vmem>>, vector<4x16x16xf32>
    tpu.vector_store %arg2[%35, %c0_27, %c0_28], %34 {strides = array<i32>} : memref<4x16x16xf32, #tpu.memory_space<vmem>>, vector<4x16x16xf32>,
    %c1_i32 = arith.constant 1 : i32
    return
  }
  func.func @transform_0(%arg0: i32) -> (i32, i32, i32) {
    %c0_i32 = arith.constant 0 : i32
    %c0_i32_0 = arith.constant 0 : i32
    %c0_i32_1 = arith.constant 0 : i32
    return %arg0, %c0_i32, %c0_i32_0 : i32, i32, i32
  }
  func.func @transform_1(%arg0: i32) -> (i32, i32, i32) {
    %c0_i32 = arith.constant 0 : i32
    %c0_i32_0 = arith.constant 0 : i32
    %c0_i32_1 = arith.constant 0 : i32
    return %arg0, %c0_i32, %c0_i32_0 : i32, i32, i32
  }
}

</mosaic_0001>

<bundles_post_ra>
// kernel: tpu_custom_call.1
= control target key start
LH: loop header
LB: loop body
LE: loop exit
PB: predicated region body
PF: predicated region fallthrough
CT: control target
= control target key end

     0   :  { %6 = vsyncpa [#allocation4], 0  ;;  %s1565_s0 = inlined_call_operand.hbm [shape: f32[8,16,16], index: 0, kind: input, shape index: {}]   ;;  %s1566_s1 = inlined_call_operand.hbm [shape: f32[8,16,16], index: 1, kind: output, shape index: {}]  }
   0x1   :  { %8 = vsyncpa [#allocation4 + $0x1], 0 }
   0x2   :  { %9 = vsyncpa [#allocation5], 0 }
   0x3   :  { %11 = vsyncpa [#allocation5 + $0x1], 0  ;;  %s1050_s6 = smov 0   ;;  %s1052_s7 = smov 0  }
   0x4   :  { %s1054_s8 = smov 0   ;;  %s1056_s9 = smov 0  }
   0x5 LB: > { %s1071_s10 = sadd.s32 4294967295, %s1028_s9   ;;  %s840_s11 = sadd.s32 4294967294, %s1028_s9   ;;  %s1028_s9 = sphi %s1056_s9, %s1580_s9   ;;  %s1024_s8 = sphi %s1054_s8, %s1579_s8   ;;  %s1020_s7 = sphi %s1052_s7, %s1578_s7   ;;  %s1016_s6 = sphi %s1050_s6, %s1577_s6  }
   0x6   : > { %s1075_s12 = sadd.s32 1, %s1028_s9   ;;  %s24_s13 = sadd.s32 1, %s1024_s8 }
   0x7   : > { %s21_s14 = ssub.s32 %s1028_s9, %s1075_s12  ;;  %p31_p0 = scmp.ne.s32.totalorder %s1024_s8, %s1020_s7 }
   0x8   : > { %p22_p1 = scmp.eq.s32.totalorder %s21_s14, 0  ;;  %p32_p2 = scmp.eq.s32.totalorder %s1028_s9, 0 }
   0x9   : > { %p37_p3 = scmp.ne.s32.totalorder %s1020_s7, %s1016_s6  ;;  %p38_p4 = scmp.eq.s32.totalorder %s1071_s10, 0 }
   0xa   : > { %s1087_s15 = scalar_select %p22_p1, %s1024_s8, %s24_s13  }
   0xb   : > { %p1089_p5 = por %p32_p2, %p31_p0  ;;  %p1093_p6 = por %p38_p4, %p37_p3 }
   0xc   : > { %p61_p7 = scmp.eq.s32.totalorder %s1071_s10, 1  ;;  %p67_p8 = scmp.eq.s32.totalorder %s840_s11, 1 }
   0xd   : > { %p872_p10 = scmp.lt.s32.totalorder %s1028_s9, 2  ;;  %s87_s20 = sand.u32 1, %s1024_s8  }
   0xe   : > { %p1100_p11 = por %p61_p7, %p31_p0  ;;  %p1104_p12 = por %p67_p8, %p37_p3 }
   0xf   : > { %s857_s21 = sshll.u32 %s1028_s9, 6  ;;  %s843_s22 = sshll.u32 %s87_s20, 6 }
  0x10   : > { %s97_s25 = scalar_lea.hbm %s1565_s0, %s857_s21  ;;  %s91_s27 = scalar_lea.vmem [#allocation3], %s843_s22 }
  0x11   : > { %s98_s26 = sshll.u32 %s97_s25, 4  ;;  %s100_s28 = sshll.u32 %s91_s27, 4  ;;  %s99_s26 = int_to_ptr.hbm [resolvable:$true] %s98_s26  ;;  %s101_s28 = int_to_ptr.vmem [resolvable:$true] %s100_s28 }
  0x12   : > { %p1115_p13 = pnand %p872_p10, %p1089_p5  ;;  %p847_p0 = scmp.ge.s32.totalorder %s1028_s9, 1 }
  0x13   : > { %p108_p1 = scmp.lt.s32.totalorder %s1028_s9, 3  ;;  %s88_s30 = scalar_lea.sflag [#allocation4], %s87_s20 }
  0x14   : > { %s932_s2 = sshra.s32 %s99_s26, 4  ;;  %p936_p3 = pneg %p1115_p13  ;;  %s933_s2 = int_to_ptr.hbm [resolvable:$true] %s932_s2 }
  0x15   : > { %s934_s3 = scalar_lea.hbm %s933_s2, 64  ;;  %s939_s11 = scalar_lea.hbm %s1565_s0, 128 }
  0x16   : > { %p935_p2 = scmp.ne.s32.totalorder %s933_s2, %s934_s3  ;;  %p940_p5 = scmp.lt.s32.totalorder %s933_s2, %s1565_s0 }
  0x17   : > { %p941_p8 = scmp.lt.s32.totalorder %s939_s11, %s934_s3 }
  0x18   : > { %p937_p4 = pnand %p936_p3, %p935_p2 }
  0x19   : > { %p942_p10 = por %p941_p8, %p940_p5 }
  0x1a   : > { %p938_p7 = pneg %p937_p4 }
  0x1c   : > { %p943_p9 = pnand %p942_p10, %p938_p7 }
  0x1e   : > { %946 = shalt.err (!%p943_p9)
}
  0x1f   : > { %s1030_s16 = smov 128   ;;  %s1031_s20 = smov 8  }
  0x20   : > { %867 = dma.hbm_to_vmem [thread:$0]  (!%p1115_p13), %s99_s26, 1024, %s101_s28, %s88_s30, %s1030_s16, %s1030_s16, %s1031_s20  }
  0x21   : > { %p109_p2 = pnand %p847_p0, %p108_p1 }
  0x22   : > { %s1136_s21 = sand.u32 (!%p109_p2), 1, %s1020_s7  }
  0x23   : > { %112 = sbr.rel (%p109_p2) target bundleno = 464 (0x1d0), region = 24  ;;  %s848_s22 = sshll.u32 (!%p109_p2), %s1136_s21, 6 }
  0x24   : > { %s115_s23 = scalar_lea.sflag (!%p109_p2), [#allocation4], %s1136_s21  ;;  %s1142_s24 = scalar_lea.vmem (!%p109_p2), [#allocation3], %s848_s22 }
  0x28   : > { %1007 = dma.done.wait (%p1093_p6), %s115_s23, 1024  }
  0x29   : > { %1009 = vsyncadd (%p1093_p6), %s115_s23, 4294966272  ;;  %vm140_vm0 = vcmask 156672   ;;  %vm149_vm1 = vcmask 15360   ;;  %v1032_v0 = vmov 0.0   ;;  %vm163_vm2 = vcmask 162960   ;;  %v1155_v1 = vld [vmem:[%s1142_s24 + $0x10] sm:$0xff] }
  0x2a   : > { %142 = vst.msk [vmem:[#allocation2 + $0x26] sm:$0x3] %vm140_vm0, %v1032_v0  ;;  %v1158_v2 = vld [vmem:[%s1142_s24] sm:$0xff]  ;;  %v189_v3 = vand.u32 2147483647, %v1155_v1  ;;  %s1033_s17 = smov 2  }
  0x2b   : > { %154 = vst.msk [vmem:[#allocation2 + $0x26] sm:$0xff] %vm149_vm1, %v1032_v0  ;;  %v187_v4 = vand.u32 2147483647, %v1158_v2  ;;  %v1164_v5 = vld [vmem:[%s1142_s24 + $0x20] sm:$0xff]  ;;  %v1171_v7 = vld [vmem:[%s1142_s24 + $0x18] sm:$0xff]  ;;  %v1174_v8 = vld [vmem:[%s1142_s24 + $0x8] sm:$0xff] }
  0x2c   : > { %155 = vst.msk [vmem:[#allocation2 + $0x2e] sm:$0xff] %vm149_vm1, %v1032_v0  ;;  %207 = vrot.lane.b32.xlu1 %v189_v3, %s1033_s17  ;;  %v191_v6 = vand.u32 2147483647, %v1164_v5  ;;  %v1180_v9 = vld [vmem:[%s1142_s24 + $0x28] sm:$0xff]  ;;  %v190_v10 = vand.u32 2147483647, %v1171_v7 }
  0x2d   : > { %168 = vst.msk [vmem:[#allocation2 + $0x26] sm:$0xff] %vm163_vm2, %v1032_v0  ;;  %203 = vrot.lane.b32.xlu0 %v187_v4, %s1033_s17  ;;  %v188_v11 = vand.u32 2147483647, %v1174_v8  ;;  %v192_v12 = vand.u32 2147483647, %v1180_v9  ;;  %v1194_v13 = vld [vmem:[%s1142_s24 + $0x30] sm:$0xff] }
  0x2e   : > { %169 = vst.msk [vmem:[#allocation2 + $0x2e] sm:$0xff] %vm163_vm2, %v1032_v0  ;;  %211 = vrot.lane.b32.xlu2 %v191_v6, %s1033_s17  ;;  %v1197_v14 = vld [vmem:[%s1142_s24 + $0x38] sm:$0xff]  ;;  %v193_v15 = vand.u32 2147483647, %v1194_v13  ;;  %vm152_vm3 = vcmask 11264   ;;  %vm166_vm4 = vcmask 158864  }
  0x2f   : > { %141 = vst.msk [vmem:[#allocation2 + $0x6] sm:$0x3] %vm140_vm0, %v1032_v0  ;;  %v194_v16 = vand.u32 2147483647, %v1197_v14  ;;  %vm227_vm5 = vcmask 146448   ;;  %s1034_s25 = smov 127  }
  0x30   : > { %143 = vst.msk [vmem:[#allocation2 + $0x46] sm:$0x3] %vm140_vm0, %v1032_v0  ;;  %s1035_s26 = smov 126   ;;  %s1036_s27 = smov 125   ;;  %vm464_vm6 = vcmask 1046528   ;;  %vm501_vm7 = vcmask 1045504  }
  0x31   : > { %144 = vst.msk [vmem:[#allocation2 + $0x66] sm:$0x3] %vm140_vm0, %v1032_v0  ;;  %s1037_s28 = smov 124   ;;  %vm538_vm8 = vcmask 1044480   ;;  %vm575_vm9 = vcmask 1043456   ;;  %vm741_vm12 = vcmask 130048  }
  0x32   : > { %145 = vst.msk [vmem:[#allocation2 + $0x18] sm:$0x3] %vm140_vm0, %v1032_v0  ;;  %s1452_s29 = scalar_lea.vmem [#allocation6], %s848_s22  ;;  %s859_s30 = sshll.u32 %s1071_s10, 6 }
  0x33   : > { %146 = vst.msk [vmem:[#allocation2 + $0x38] sm:$0x3] %vm140_vm0, %v1032_v0  ;;  %s763_s4 = scalar_lea.hbm %s1566_s1, %s859_s30  ;;  %s764_s10 = sshll.u32 %s1452_s29, 4  ;;  %s765_s10 = int_to_ptr.vmem [resolvable:$true] %s764_s10 }
  0x34   : > { %147 = vst.msk [vmem:[#allocation2 + $0x58] sm:$0x3] %vm140_vm0, %v1032_v0  ;;  %209 = vrot.lane.b32.xlu1 %v190_v10, %s1033_s17  ;;  %s766_s5 = sshll.u32 %s763_s4, 4  ;;  %s751_s11 = scalar_lea.sflag [#allocation5], %s1136_s21  ;;  %s767_s5 = int_to_ptr.hbm [resolvable:$true] %s766_s5 }
  0x35   : > { %148 = vst.msk [vmem:[#allocation2 + $0x78] sm:$0x3] %vm140_vm0, %v1032_v0  ;;  %205 = vrot.lane.b32.xlu0 %v188_v11, %s1033_s17  ;;  %s976_s13 = sshra.s32 %s767_s5, 4  ;;  %s982_s22 = scalar_lea.hbm %s1566_s1, 128  ;;  %s977_s13 = int_to_ptr.hbm [resolvable:$true] %s976_s13 }
  0x36   : > { %151 = vst.msk [vmem:[#allocation2 + $0xe] sm:$0xff] %vm149_vm1, %v1032_v0  ;;  %213 = vrot.lane.b32.xlu2 %v192_v12, %s1033_s17  ;;  %s978_s14 = scalar_lea.hbm %s977_s13, 64  ;;  %p983_p0 = scmp.lt.s32.totalorder %s977_s13, %s1566_s1 }
  0x37   : > { %158 = vst.msk [vmem:[#allocation2 + $0x4e] sm:$0xff] %vm149_vm1, %v1032_v0  ;;  %p979_p6 = scmp.ne.s32.totalorder %s977_s13, %s978_s14  ;;  %p984_p1 = scmp.lt.s32.totalorder %s982_s22, %s978_s14 }
  0x38   : > { %161 = vst.msk [vmem:[#allocation2 + $0x6e] sm:$0xff] %vm149_vm1, %v1032_v0 }
  0x39   : > { %150 = vst.msk [vmem:[#allocation2 + $0x6] sm:$0xff] %vm149_vm1, %v1032_v0  ;;  %p980_p9 = pnand %p979_p6, %p1100_p11  ;;  %p985_p3 = por %p984_p1, %p983_p0 }
  0x3a   : > { %164 = vst.msk [vmem:[#allocation2 + $0x6] sm:$0xff] %vm163_vm2, %v1032_v0 }
  0x3b   : > { %165 = vst.msk [vmem:[#allocation2 + $0xe] sm:$0xff] %vm163_vm2, %v1032_v0  ;;  %p981_p13 = pneg %p980_p9 }
  0x3c   : > { %157 = vst.msk [vmem:[#allocation2 + $0x46] sm:$0xff] %vm149_vm1, %v1032_v0  ;;  %217 = vrot.lane.b32.xlu1 %v194_v16, %s1033_s17 }
  0x3d   : > { %160 = vst.msk [vmem:[#allocation2 + $0x66] sm:$0xff] %vm149_vm1, %v1032_v0  ;;  %215 = vrot.lane.b32.xlu0 %v193_v15, %s1033_s17  ;;  %p986_p4 = pnand %p985_p3, %p981_p13 }
  0x3e   : > { %172 = vst.msk [vmem:[#allocation2 + $0x4e] sm:$0xff] %vm163_vm2, %v1032_v0 }
  0x3f   : > { %175 = vst.msk [vmem:[#allocation2 + $0x6e] sm:$0xff] %vm163_vm2, %v1032_v0 }
  0x40   : > { %171 = vst.msk [vmem:[#allocation2 + $0x46] sm:$0xff] %vm163_vm2, %v1032_v0 }
  0x41   : > { %174 = vst.msk [vmem:[#allocation2 + $0x66] sm:$0xff] %vm163_vm2, %v1032_v0 }
  0x42   : > { %156 = vst.msk [vmem:[#allocation2 + $0x36] sm:$0xf] %vm152_vm3, %v1032_v0 }
  0x43   : > { %170 = vst.msk [vmem:[#allocation2 + $0x36] sm:$0xf] %vm166_vm4, %v1032_v0 }
  0x44   : > { %153 = vst.msk [vmem:[#allocation2 + $0x16] sm:$0xf] %vm152_vm3, %v1032_v0 }
  0x45   : > { %159 = vst.msk [vmem:[#allocation2 + $0x56] sm:$0xf] %vm152_vm3, %v1032_v0 }
  0x46   : > { %162 = vst.msk [vmem:[#allocation2 + $0x76] sm:$0xf] %vm152_vm3, %v1032_v0 }
  0x47   : > { %167 = vst.msk [vmem:[#allocation2 + $0x16] sm:$0xf] %vm166_vm4, %v1032_v0 }
  0x48   : > { %173 = vst.msk [vmem:[#allocation2 + $0x56] sm:$0xf] %vm166_vm4, %v1032_v0 }
  0x49   : > { %176 = vst.msk [vmem:[#allocation2 + $0x76] sm:$0xf] %vm166_vm4, %v1032_v0 }
  0x88   : > { %v212_v17 = vpop.permute.xlu2 %211 }
  0x89   : > { %232 = vst.msk [vmem:[#allocation2 + $0x48] sm:$0xff] %vm227_vm5, %v212_v17 }
  0x90   : > { %v214_v18 = vpop.permute.xlu2 %213  ;;  %v1234_v30 = vld [vmem:[#allocation2 + $0x46] sm:$0xff] }
  0x91   : > { %233 = vst.msk [vmem:[#allocation2 + $0x50] sm:$0xff] %vm227_vm5, %v214_v18 }
  0x98   : > { %v1241_v32 = vld [vmem:[#allocation2 + $0x56] sm:$0xf]  ;;  %v1245_v34 = vld [vmem:[#allocation2 + $0x4e] sm:$0xff] }
  0x9e   : > { %v208_v19 = vpop.permute.xlu1 %207 }
  0x9f   : > { %v204_v20 = vpop.permute.xlu0 %203  ;;  %230 = vst.msk [vmem:[#allocation2 + $0x28] sm:$0xff] %vm227_vm5, %v208_v19 }
  0xa0   : > { %228 = vst.msk [vmem:[#allocation2 + $0x8] sm:$0xff] %vm227_vm5, %v204_v20 }
  0xa6   : > { %v210_v21 = vpop.permute.xlu1 %209  ;;  %v1221_v24 = vld [vmem:[#allocation2 + $0x26] sm:$0xff] }
  0xa7   : > { %v206_v22 = vpop.permute.xlu0 %205  ;;  %231 = vst.msk [vmem:[#allocation2 + $0x30] sm:$0xff] %vm227_vm5, %v210_v21  ;;  %v1217_v23 = vld [vmem:[#allocation2 + $0x6] sm:$0xff] }
  0xa8   : > { %229 = vst.msk [vmem:[#allocation2 + $0x10] sm:$0xff] %vm227_vm5, %v206_v22  ;;  %260 = vrot.lane.b32.xlu2 %v1217_v23, %s1034_s25 }
  0xae   : > { %v218_v26 = vpop.permute.xlu1 %217  ;;  %v1232_v29 = vld [vmem:[#allocation2 + $0x36] sm:$0xf]  ;;  %v1236_v31 = vld [vmem:[#allocation2 + $0x2e] sm:$0xff] }
  0xaf   : > { %v216_v25 = vpop.permute.xlu0 %215  ;;  %v1223_v27 = vld [vmem:[#allocation2 + $0x16] sm:$0xf]  ;;  %v1225_v28 = vld [vmem:[#allocation2 + $0xe] sm:$0xff]  ;;  %235 = vst.msk [vmem:[#allocation2 + $0x70] sm:$0xff] %vm227_vm5, %v218_v26 }
  0xb0   : > { %234 = vst.msk [vmem:[#allocation2 + $0x68] sm:$0xff] %vm227_vm5, %v216_v25  ;;  %264 = vrot.lane.b32.xlu1 %v1223_v27, %s1034_s25  ;;  %262 = vrot.lane.b32.xlu0 %v1225_v28, %s1034_s25 }
  0xb1   : > { %266 = vrot.lane.b32.xlu2 %v1221_v24, %s1034_s25 }
  0xb6   : > { %v1250_v35 = vld [vmem:[#allocation2 + $0x76] sm:$0xf] }
  0xb7   : > { %v1243_v33 = vld [vmem:[#allocation2 + $0x66] sm:$0xff]  ;;  %v1252_v36 = vld [vmem:[#allocation2 + $0x6e] sm:$0xff] }
  0xb8   : > { %270 = vrot.lane.b32.xlu1 %v1232_v29, %s1034_s25  ;;  %268 = vrot.lane.b32.xlu0 %v1236_v31, %s1034_s25 }
  0xb9   : > { %272 = vrot.lane.b32.xlu2 %v1234_v30, %s1034_s25 }
  0xc0   : > { %276 = vrot.lane.b32.xlu1 %v1241_v32, %s1034_s25  ;;  %274 = vrot.lane.b32.xlu0 %v1245_v34, %s1034_s25 }
  0xc1   : > { %278 = vrot.lane.b32.xlu2 %v1243_v33, %s1034_s25 }
  0xc8   : > { %282 = vrot.lane.b32.xlu1 %v1250_v35, %s1034_s25  ;;  %280 = vrot.lane.b32.xlu0 %v1252_v36, %s1034_s25 }
  0xc9   : > { %308 = vrot.lane.b32.xlu2 %v1217_v23, %s1035_s26 }
  0xd0   : > { %312 = vrot.lane.b32.xlu1 %v1223_v27, %s1035_s26  ;;  %310 = vrot.lane.b32.xlu0 %v1225_v28, %s1035_s26 }
  0xd1   : > { %314 = vrot.lane.b32.xlu2 %v1221_v24, %s1035_s26 }
  0xd8   : > { %318 = vrot.lane.b32.xlu1 %v1232_v29, %s1035_s26  ;;  %316 = vrot.lane.b32.xlu0 %v1236_v31, %s1035_s26 }
  0xd9   : > { %320 = vrot.lane.b32.xlu2 %v1234_v30, %s1035_s26 }
  0xe0   : > { %324 = vrot.lane.b32.xlu1 %v1241_v32, %s1035_s26  ;;  %322 = vrot.lane.b32.xlu0 %v1245_v34, %s1035_s26 }
  0xe1   : > { %326 = vrot.lane.b32.xlu2 %v1243_v33, %s1035_s26 }
  0xe8   : > { %330 = vrot.lane.b32.xlu1 %v1250_v35, %s1035_s26  ;;  %328 = vrot.lane.b32.xlu0 %v1252_v36, %s1035_s26 }
  0xe9   : > { %356 = vrot.lane.b32.xlu2 %v1217_v23, %s1036_s27 }
  0xf0   : > { %360 = vrot.lane.b32.xlu1 %v1223_v27, %s1036_s27  ;;  %358 = vrot.lane.b32.xlu0 %v1225_v28, %s1036_s27 }
  0xf1   : > { %362 = vrot.lane.b32.xlu2 %v1221_v24, %s1036_s27 }
  0xf8   : > { %366 = vrot.lane.b32.xlu1 %v1232_v29, %s1036_s27  ;;  %364 = vrot.lane.b32.xlu0 %v1236_v31, %s1036_s27 }
  0xf9   : > { %368 = vrot.lane.b32.xlu2 %v1234_v30, %s1036_s27 }
 0x100   : > { %372 = vrot.lane.b32.xlu1 %v1241_v32, %s1036_s27  ;;  %370 = vrot.lane.b32.xlu0 %v1245_v34, %s1036_s27 }
 0x101   : > { %374 = vrot.lane.b32.xlu2 %v1243_v33, %s1036_s27 }
 0x102   : > { %v1278_v37 = vpop.permute.xlu2 %260 }
 0x108   : > { %378 = vrot.lane.b32.xlu1 %v1250_v35, %s1036_s27  ;;  %376 = vrot.lane.b32.xlu0 %v1252_v36, %s1036_s27 }
 0x109   : > { %404 = vrot.lane.b32.xlu2 %v1217_v23, %s1037_s28 }
 0x10b   : > { %v1283_v38 = vpop.permute.xlu2 %266 }
 0x110   : > { %408 = vrot.lane.b32.xlu1 %v1223_v27, %s1037_s28  ;;  %406 = vrot.lane.b32.xlu0 %v1225_v28, %s1037_s28 }
 0x111   : > { %410 = vrot.lane.b32.xlu2 %v1221_v24, %s1037_s28 }
 0x113   : > { %v273_v39 = vpop.permute.xlu2 %272 }
 0x114   : > { %v302_v47 = vmax.f32 %v1234_v30, %v273_v39 }
 0x118   : > { %414 = vrot.lane.b32.xlu1 %v1232_v29, %s1037_s28  ;;  %412 = vrot.lane.b32.xlu0 %v1236_v31, %s1037_s28 }
 0x119   : > { %416 = vrot.lane.b32.xlu2 %v1234_v30, %s1037_s28 }
 0x11b   : > { %v279_v40 = vpop.permute.xlu2 %278 }
 0x11c   : > { %v305_v52 = vmax.f32 %v1243_v33, %v279_v40 }
 0x120   : > { %420 = vrot.lane.b32.xlu1 %v1241_v32, %s1037_s28  ;;  %418 = vrot.lane.b32.xlu0 %v1245_v34, %s1037_s28 }
 0x121   : > { %422 = vrot.lane.b32.xlu2 %v1243_v33, %s1037_s28 }
 0x122   : > { %v265_v41 = vpop.permute.xlu1 %264  ;;  %v263_v42 = vpop.permute.xlu0 %262 }
 0x123   : > { %v309_v43 = vpop.permute.xlu2 %308  ;;  %v298_v40 = vmax.f32 %v1223_v27, %v265_v41 }
 0x128   : > { %426 = vrot.lane.b32.xlu1 %v1250_v35, %s1037_s28  ;;  %424 = vrot.lane.b32.xlu0 %v1252_v36, %s1037_s28 }
 0x12a   : > { %v271_v44 = vpop.permute.xlu1 %270  ;;  %v269_v45 = vpop.permute.xlu0 %268 }
 0x12b   : > { %v315_v46 = vpop.permute.xlu2 %314 }
 0x132   : > { %v277_v48 = vpop.permute.xlu1 %276  ;;  %v275_v49 = vpop.permute.xlu0 %274 }
 0x133   : > { %v321_v50 = vpop.permute.xlu2 %320  ;;  %v304_v62 = vmax.f32 %v1241_v32, %v277_v48  ;;  %v303_v63 = vmax.f32 %v1245_v34, %v275_v49  ;;  %v296_v34 = vmax.f32 %v1217_v23, %v1278_v37  ;;  %v299_v49 = vmax.f32 %v1221_v24, %v1283_v38 }
 0x134   : > { %v1297_v51 = vmax.f32 %v302_v47, %v321_v50  ;;  %v297_v47 = vmax.f32 %v1225_v28, %v263_v42  ;;  %v300_v23 = vmax.f32 %v1236_v31, %v269_v45 }
 0x135   : > { %v344_v39 = vmax.f32 %v296_v34, %v309_v43  ;;  %v347_v37 = vmax.f32 %v299_v49, %v315_v46 }
 0x13a   : > { %v283_v53 = vpop.permute.xlu1 %282  ;;  %v281_v54 = vpop.permute.xlu0 %280 }
 0x13b   : > { %v327_v55 = vpop.permute.xlu2 %326  ;;  %v307_v11 = vmax.f32 %v1250_v35, %v283_v53  ;;  %v306_v12 = vmax.f32 %v1252_v36, %v281_v54 }
 0x13c   : > { %v1300_v56 = vmax.f32 %v305_v52, %v327_v55  ;;  %v301_v52 = vmax.f32 %v1232_v29, %v271_v44 }
 0x142   : > { %v313_v57 = vpop.permute.xlu1 %312  ;;  %v311_v58 = vpop.permute.xlu0 %310 }
 0x143   : > { %v357_v61 = vpop.permute.xlu2 %356  ;;  %v346_v53 = vmax.f32 %v298_v40, %v313_v57  ;;  %v345_v54 = vmax.f32 %v297_v47, %v311_v58 }
 0x144   : > { %v392_v50 = vmax.f32 %v344_v39, %v357_v61 }
 0x14a   : > { %v319_v59 = vpop.permute.xlu1 %318  ;;  %v317_v60 = vpop.permute.xlu0 %316 }
 0x14b   : > { %v363_v10 = vpop.permute.xlu2 %362 }
 0x14c   : > { %v395_v27 = vmax.f32 %v347_v37, %v363_v10 }
 0x152   : > { %v325_v0 = vpop.permute.xlu1 %324  ;;  %v323_v3 = vpop.permute.xlu0 %322 }
 0x153   : > { %v1304_v4 = vmax.f32 %v304_v62, %v325_v0  ;;  %v1306_v6 = vmax.f32 %v303_v63, %v323_v3  ;;  %v1314_v19 = vpop.permute.xlu2 %368  ;;  %v349_v62 = vmax.f32 %v301_v52, %v319_v59  ;;  %v348_v0 = vmax.f32 %v300_v23, %v317_v60 }
 0x154   : > { %v398_v28 = vmax.f32 %v1297_v51, %v1314_v19 }
 0x15a   : > { %v331_v15 = vpop.permute.xlu1 %330  ;;  %v329_v16 = vpop.permute.xlu0 %328 }
 0x15b   : > { %v1310_v17 = vmax.f32 %v307_v11, %v331_v15  ;;  %v1312_v18 = vmax.f32 %v306_v12, %v329_v16  ;;  %v1316_v22 = vpop.permute.xlu2 %374 }
 0x162   : > { %v361_v20 = vpop.permute.xlu1 %360  ;;  %v359_v21 = vpop.permute.xlu0 %358 }
 0x163   : > { %v405_v33 = vpop.permute.xlu2 %404  ;;  %v394_v63 = vmax.f32 %v346_v53, %v361_v20  ;;  %v393_v43 = vmax.f32 %v345_v54, %v359_v21 }
 0x164   : > { %v440_v55 = vmax.f32 %v392_v50, %v405_v33 }
 0x166   : > { %v465_v42 = vrot.slane %v440_v55, 1  ;;  %v502_v44 = vrot.slane %v440_v55, 2  ;;  %v539_v3 = vrot.slane %v440_v55, 3  ;;  %v576_v10 = vrot.slane %v440_v55, 4 }
 0x16a   : > { %v1318_v25 = vpop.permute.xlu1 %366  ;;  %v1320_v26 = vpop.permute.xlu0 %364 }
 0x16b   : > { %v411_v48 = vpop.permute.xlu2 %410  ;;  %v397_v11 = vmax.f32 %v349_v62, %v1318_v25  ;;  %v396_v12 = vmax.f32 %v348_v0, %v1320_v26  ;;  %v401_v25 = vmax.f32 %v1300_v56, %v1316_v22 }
 0x16c   : > { %v1340_v31 = vmax.f32 %v395_v27, %v411_v48 }
 0x16e   : > { %v470_v26 = vrot.slane %v1340_v31, 1  ;;  %v507_v37 = vrot.slane %v1340_v31, 2  ;;  %v581_v62 = vrot.slane %v1340_v31, 4 }
 0x172   : > { %v1322_v30 = vpop.permute.xlu1 %372  ;;  %v1324_v32 = vpop.permute.xlu0 %370 }
 0x173   : > { %v417_v15 = vpop.permute.xlu2 %416 }
 0x17a   : > { %v1328_v35 = vpop.permute.xlu1 %378  ;;  %v1330_v36 = vpop.permute.xlu0 %376 }
 0x182   : > { %v409_v41 = vpop.permute.xlu1 %408  ;;  %v407_v24 = vpop.permute.xlu0 %406 }
 0x183   : > { %v442_v38 = vmax.f32 %v394_v63, %v409_v41  ;;  %v441_v29 = vmax.f32 %v393_v43, %v407_v24  ;;  %v1358_v63 = vmax.f32 %v398_v28, %v417_v15 }
 0x185   : > { %v468_v45 = vrot.slane %v442_v38, 1  ;;  %v505_v46 = vrot.slane %v442_v38, 2  ;;  %v542_v57 = vrot.slane %v442_v38, 3  ;;  %v579_v58 = vrot.slane %v442_v38, 4 }
 0x186   : > { %v466_v59 = vrot.slane %v441_v29, 1  ;;  %v503_v60 = vrot.slane %v441_v29, 2  ;;  %v540_v61 = vrot.slane %v441_v29, 3  ;;  %v577_v51 = vrot.slane %v441_v29, 4 }
 0x188   : > { %v467_v16 = vsel %vm464_vm6, %v465_v42, %v466_v59  ;;  %v469_v19 = vsel %vm464_vm6, %v466_v59, %v468_v45  ;;  %v504_v20 = vsel %vm501_vm7, %v502_v44, %v503_v60  ;;  %v506_v21 = vsel %vm501_vm7, %v503_v60, %v505_v46  ;;  %v423_v59 = vpop.permute.xlu2 %422 }
 0x189   : > { %v493_v33 = vmax.f32 %v440_v55, %v467_v16  ;;  %v494_v34 = vmax.f32 %v441_v29, %v469_v19  ;;  %v541_v39 = vsel %vm538_vm8, %v539_v3, %v540_v61  ;;  %v543_v40 = vsel %vm538_vm8, %v540_v61, %v542_v57 }
 0x18a   : > { %v578_v47 = vsel %vm575_vm9, %v576_v10, %v577_v51  ;;  %v580_v48 = vsel %vm575_vm9, %v577_v51, %v579_v58  ;;  %v415_v49 = vpop.permute.xlu1 %414  ;;  %v413_v50 = vpop.permute.xlu0 %412  ;;  %v544_v55 = vrot.slane %v1340_v31, 3  ;;  %v400_v16 = vmax.f32 %v1304_v4, %v1322_v30 }
 0x18b   : > { %v530_v52 = vmax.f32 %v493_v33, %v504_v20  ;;  %v531_v53 = vmax.f32 %v494_v34, %v506_v21  ;;  %v445_v54 = vmax.f32 %v397_v11, %v415_v49  ;;  %v444_v23 = vmax.f32 %v396_v12, %v413_v50 }
 0x18c   : > { %v399_v21 = vmax.f32 %v1306_v6, %v1324_v32  ;;  %v1379_v33 = vmax.f32 %v401_v25, %v423_v59  ;;  %v512_v34 = vrot.slane %v1358_v63, 2  ;;  %v586_v4 = vrot.slane %v1358_v63, 4 }
 0x18d   : > { %v567_v56 = vmax.f32 %v530_v52, %v541_v39  ;;  %v568_v22 = vmax.f32 %v531_v53, %v543_v40  ;;  %v473_v43 = vrot.slane %v445_v54, 1  ;;  %v510_v0 = vrot.slane %v445_v54, 2 }
 0x18e   : > { %v547_v27 = vrot.slane %v445_v54, 3  ;;  %v584_v41 = vrot.slane %v445_v54, 4  ;;  %v471_v24 = vrot.slane %v444_v23, 1  ;;  %v508_v38 = vrot.slane %v444_v23, 2 }
 0x18f   : > { %v604_v29 = vmax.f32 %v567_v56, %v578_v47  ;;  %v605_v42 = vmax.f32 %v568_v22, %v580_v48  ;;  %v545_v44 = vrot.slane %v444_v23, 3  ;;  %v582_v45 = vrot.slane %v444_v23, 4 }
 0x190   : > { %v472_v46 = vsel %vm464_vm6, %v470_v26, %v471_v24  ;;  %v474_v57 = vsel %vm464_vm6, %v471_v24, %v473_v43  ;;  %v509_v58 = vsel %vm501_vm7, %v507_v37, %v508_v38  ;;  %v511_v28 = vsel %vm501_vm7, %v508_v38, %v510_v0 }
 0x191   : > { %v1364_v60 = vadd.f32 1.0, %v604_v29  ;;  %v1366_v61 = vadd.f32 1.0, %v605_v42  ;;  %v495_v51 = vmax.f32 %v1340_v31, %v472_v46  ;;  %v496_v3 = vmax.f32 %v444_v23, %v474_v57 }
 0x192   : > { %v546_v10 = vsel %vm538_vm8, %v544_v55, %v545_v44  ;;  %v548_v11 = vsel %vm538_vm8, %v545_v44, %v547_v27  ;;  %v583_v12 = vsel %vm575_vm9, %v581_v62, %v582_v45  ;;  %v585_v15 = vsel %vm575_vm9, %v582_v45, %v584_v41  ;;  %v421_v19 = vpop.permute.xlu1 %420  ;;  %v419_v20 = vpop.permute.xlu0 %418 }
 0x193   : > { %916 = vrcp.f32 %v1364_v60  ;;  %v475_v31 = vrot.slane %v1358_v63, 1  ;;  %v549_v39 = vrot.slane %v1358_v63, 3  ;;  %v532_v40 = vmax.f32 %v495_v51, %v509_v58 }
 0x194   : > { %918 = vrcp.f32 %v1366_v61  ;;  %v533_v26 = vmax.f32 %v496_v3, %v511_v28  ;;  %v403_v30 = vmax.f32 %v1310_v17, %v1328_v35  ;;  %v1387_v47 = vmax.f32 %v400_v16, %v421_v19 }
 0x195   : > { %v1389_v6 = vmax.f32 %v399_v21, %v419_v20  ;;  %v402_v32 = vmax.f32 %v1312_v18, %v1330_v36  ;;  %v629_v25 = vand.u32 2147483647, %v1364_v60  ;;  %v569_v48 = vmax.f32 %v532_v40, %v546_v10 }
 0x196   : > { %v570_v49 = vmax.f32 %v533_v26, %v548_v11  ;;  %v480_v50 = vrot.slane %v1379_v33, 1  ;;  %vm625_vm10 = vweird.f32 %v1364_v60  ;;  %v631_v52 = vand.u32 2147483648, %v1364_v60 }
 0x197   : > { %v478_v53 = vrot.slane %v1387_v47, 1  ;;  %v606_v23 = vmax.f32 %v569_v48, %v583_v12  ;;  %v476_v55 = vrot.slane %v1389_v6, 1  ;;  %v513_v62 = vrot.slane %v1389_v6, 2 }
 0x198   : > { %v607_v37 = vmax.f32 %v570_v49, %v585_v15  ;;  %vm640_vm11 = vweird.f32 %v1366_v61  ;;  %v644_v43 = vand.u32 2147483647, %v1366_v61  ;;  %v646_v0 = vand.u32 2147483648, %v1366_v61 }
 0x199   : > { %v917_v54 = vpop.eup %916  ;;  %vm1404_vm13 = vcmp.eq.f32.partialorder %v629_v25, 8.507059e+37  ;;  %v1409_v24 = vadd.f32 1.0, %v606_v23  ;;  %v477_v42 = vsel %vm464_vm6, %v475_v31, %v476_v55  ;;  %v479_v44 = vsel %vm464_vm6, %v476_v55, %v478_v53 }
 0x19a   : > { %v919_v56 = vpop.eup %918  ;;  %v621_v22 = vmul.f32 %v917_v54, %v1364_v60  ;;  %v1411_v38 = vadd.f32 1.0, %v607_v37  ;;  %v514_v45 = vsel %vm501_vm7, %v512_v34, %v513_v62  ;;  %v632_v46 = vor.u32 1.1754944e-38, %v631_v52  ;;  %v427_v23 = vpop.permute.xlu1 %426 }
 0x19b   : > { %v636_v41 = vmul.f32 %v919_v56, %v1366_v61  ;;  %920 = vrcp.f32 %v1409_v24  ;;  %v515_v58 = vrot.slane %v1387_v47, 2  ;;  %vm626_vm14 = vweird.f32 %v917_v54  ;;  %v425_v37 = vpop.permute.xlu0 %424 }
 0x19c   : > { %v622_v29 = vsub.f32 1.0, %v621_v22  ;;  %922 = vrcp.f32 %v1411_v38  ;;  %v550_v59 = vrot.slane %v1389_v6, 3  ;;  %vm641_vm15 = vweird.f32 %v919_v56  ;;  %vm627_vm1 = vmor %vm625_vm10, %vm626_vm14 }
 0x19d   : > { %v637_v57 = vsub.f32 1.0, %v636_v41  ;;  %v552_v3 = vrot.slane %v1387_v47, 3  ;;  %v587_v10 = vrot.slane %v1389_v6, 4  ;;  %vm1422_vm0 = vcmp.eq.f32.partialorder %v644_v43, 8.507059e+37  ;;  %vm642_vm2 = vmor %vm640_vm11, %vm641_vm15 }
 0x19e   : > { %v623_v28 = vmul.f32 %v917_v54, %v622_v29  ;;  %v497_v15 = vmax.f32 %v1358_v63, %v477_v42  ;;  %v498_v16 = vmax.f32 %v1389_v6, %v479_v44  ;;  %v647_v20 = vor.u32 1.1754944e-38, %v646_v0 }
 0x19f   : > { %v638_v51 = vmul.f32 %v919_v56, %v637_v57  ;;  %v589_v21 = vrot.slane %v1387_v47, 4  ;;  %v516_v31 = vsel %vm501_vm7, %v513_v62, %v515_v58  ;;  %vm655_vm3 = vweird.f32 %v1409_v24 }
 0x1a0   : > { %v624_v11 = vadd.f32 %v917_v54, %v623_v28  ;;  %v534_v40 = vmax.f32 %v497_v15, %v514_v45  ;;  %v535_v26 = vmax.f32 %v498_v16, %v516_v31  ;;  %v551_v25 = vsel %vm538_vm8, %v549_v39, %v550_v59 }
 0x1a1   : > { %v639_v19 = vadd.f32 %v919_v56, %v638_v51  ;;  %v921_v6 = vpop.eup %920  ;;  %v553_v47 = vsel %vm538_vm8, %v550_v59, %v552_v3  ;;  %v588_v49 = vsel %vm575_vm9, %v586_v4, %v587_v10  ;;  %v661_v62 = vand.u32 2147483648, %v1409_v24 }
 0x1a2   : > { %v628_v34 = vsel %vm627_vm1, %v917_v54, %v624_v11  ;;  %v923_v61 = vpop.eup %922  ;;  %v651_v39 = vmul.f32 %v921_v6, %v1409_v24  ;;  %v659_v54 = vand.u32 2147483647, %v1409_v24  ;;  %vm670_vm4 = vweird.f32 %v1411_v38 }
 0x1a3   : > { %v633_v60 = vsel %vm1404_vm13, %v632_v46, %v628_v34  ;;  %v643_v48 = vsel %vm642_vm2, %v919_v56, %v639_v19  ;;  %v666_v63 = vmul.f32 %v923_v61, %v1411_v38  ;;  %v571_v56 = vmax.f32 %v534_v40, %v551_v25 }
 0x1a4   : > { %v634_v52 = vmul.f32 %v633_v60, %v1158_v2  ;;  %v648_v53 = vsel %vm1422_vm0, %v647_v20, %v643_v48  ;;  %v652_v2 = vsub.f32 1.0, %v651_v39  ;;  %v572_v4 = vmax.f32 %v535_v26, %v553_v47 }
 0x1a5   : > { %v649_v55 = vmul.f32 %v648_v53, %v1174_v8  ;;  %v590_v22 = vsel %vm575_vm9, %v587_v10, %v589_v21  ;;  %v667_v8 = vsub.f32 1.0, %v666_v63  ;;  %v608_v43 = vmax.f32 %v571_v56, %v588_v49 }
 0x1a6   : > { %742 = vst.msk [vmem:[%s1452_s29] sm:$0xff] %vm741_vm12, %v634_v52  ;;  %v1463_v0 = vmax.f32 %v403_v30, %v427_v23  ;;  %v1468_v27 = vmax.f32 %v402_v32, %v425_v37  ;;  %v653_v41 = vmul.f32 %v921_v6, %v652_v2  ;;  %vm656_vm5 = vweird.f32 %v921_v6 }
 0x1a7   : > { %743 = vst.msk [vmem:[%s1452_s29 + $0x8] sm:$0xff] %vm741_vm12, %v649_v55  ;;  %v676_v29 = vand.u32 2147483648, %v1411_v38  ;;  %v609_v42 = vmax.f32 %v572_v4, %v590_v22  ;;  %v668_v44 = vmul.f32 %v923_v61, %v667_v8  ;;  %vm671_vm10 = vweird.f32 %v923_v61  ;;  %vm657_vm13 = vmor %vm655_vm3, %vm656_vm5 }
 0x1a8   : > { %v674_v45 = vand.u32 2147483647, %v1411_v38  ;;  %v1472_v46 = vadd.f32 1.0, %v608_v43  ;;  %v654_v57 = vadd.f32 %v921_v6, %v653_v41  ;;  %vm660_vm11 = vcmp.eq.f32.partialorder %v659_v54, 8.507059e+37  ;;  %vm672_vm14 = vmor %vm670_vm4, %vm671_vm10 }
 0x1a9   : > { %v662_v17 = vor.u32 1.1754944e-38, %v661_v62  ;;  %v1474_v35 = vadd.f32 1.0, %v609_v42  ;;  %v669_v18 = vadd.f32 %v923_v61, %v668_v44  ;;  %v483_v36 = vrot.slane %v1463_v0, 1 }
 0x1aa   : > { %924 = vrcp.f32 %v1472_v46  ;;  %v481_v30 = vrot.slane %v1468_v27, 1  ;;  %v658_v32 = vsel %vm657_vm13, %v921_v6, %v654_v57  ;;  %v677_v58 = vor.u32 1.1754944e-38, %v676_v29 }
 0x1ab   : > { %926 = vrcp.f32 %v1474_v35  ;;  %v518_v28 = vrot.slane %v1468_v27, 2  ;;  %v663_v59 = vsel %vm660_vm11, %v662_v17, %v658_v32  ;;  %v673_v24 = vsel %vm672_vm14, %v923_v61, %v669_v18 }
 0x1ac   : > { %vm675_vm15 = vcmp.eq.f32.partialorder %v674_v45, 8.507059e+37  ;;  %v520_v51 = vrot.slane %v1463_v0, 2  ;;  %v517_v3 = vrot.slane %v1379_v33, 2  ;;  %v664_v10 = vmul.f32 %v663_v59, %v1155_v1 }
 0x1ad   : > { %v678_v11 = vsel %vm675_vm15, %v677_v58, %v673_v24  ;;  %v557_v12 = vrot.slane %v1463_v0, 3  ;;  %v482_v15 = vsel %vm464_vm6, %v480_v50, %v481_v30  ;;  %v484_v16 = vsel %vm464_vm6, %v481_v30, %v483_v36 }
 0x1ae   : > { %v679_v38 = vmul.f32 %v678_v11, %v1171_v7  ;;  %v554_v19 = vrot.slane %v1379_v33, 3  ;;  %744 = vst.msk [vmem:[%s1452_s29 + $0x10] sm:$0xff] %vm741_vm12, %v664_v10  ;;  %v499_v20 = vmax.f32 %v1379_v33, %v482_v15  ;;  %v500_v21 = vmax.f32 %v1468_v27, %v484_v16 }
 0x1af   : > { %v519_v1 = vsel %vm501_vm7, %v517_v3, %v518_v28  ;;  %v594_v7 = vrot.slane %v1463_v0, 4  ;;  %v521_v34 = vsel %vm501_vm7, %v518_v28, %v520_v51  ;;  %v555_v50 = vrot.slane %v1468_v27, 3 }
 0x1b0   : > { %v925_v31 = vpop.eup %924  ;;  %745 = vst.msk [vmem:[%s1452_s29 + $0x18] sm:$0xff] %vm741_vm12, %v679_v38  ;;  %v592_v40 = vrot.slane %v1468_v27, 4  ;;  %v591_v25 = vrot.slane %v1379_v33, 4  ;;  %v536_v60 = vmax.f32 %v499_v20, %v519_v1  ;;  %v537_v48 = vmax.f32 %v500_v21, %v521_v34 }
 0x1b1   : > { %v927_v26 = vpop.eup %926  ;;  %v681_v6 = vmul.f32 %v925_v31, %v1472_v46  ;;  %v689_v47 = vand.u32 2147483647, %v1472_v46  ;;  %v556_v61 = vsel %vm538_vm8, %v554_v19, %v555_v50  ;;  %v558_v52 = vsel %vm538_vm8, %v555_v50, %v557_v12 }
 0x1b2   : > { %v696_v49 = vmul.f32 %v927_v26, %v1474_v35  ;;  %v573_v39 = vmax.f32 %v536_v60, %v556_v61  ;;  %v574_v54 = vmax.f32 %v537_v48, %v558_v52  ;;  %v593_v23 = vsel %vm575_vm9, %v591_v25, %v592_v40 }
 0x1b3   : > { %v682_v53 = vsub.f32 1.0, %v681_v6  ;;  %v691_v37 = vand.u32 2147483648, %v1472_v46  ;;  %v706_v55 = vand.u32 2147483648, %v1474_v35  ;;  %v595_v62 = vsel %vm575_vm9, %v592_v40, %v594_v7 }
 0x1b4   : > { %v697_v33 = vsub.f32 1.0, %v696_v49  ;;  %vm686_vm6 = vweird.f32 %v925_v31  ;;  %v610_v56 = vmax.f32 %v573_v39, %v593_v23  ;;  %v611_v2 = vmax.f32 %v574_v54, %v595_v62 }
 0x1b5   : > { %v683_v63 = vmul.f32 %v925_v31, %v682_v53  ;;  %vm701_vm7 = vweird.f32 %v927_v26  ;;  %v704_v22 = vand.u32 2147483647, %v1474_v35  ;;  %vm685_vm8 = vweird.f32 %v1472_v46 }
 0x1b6   : > { %v698_v4 = vmul.f32 %v927_v26, %v697_v33  ;;  %v618_v43 = vadd.f32 1.0, %v610_v56  ;;  %v619_v0 = vadd.f32 1.0, %v611_v2  ;;  %vm687_vm0 = vmor %vm685_vm8, %vm686_vm6  ;;  %v692_v27 = vor.u32 1.1754944e-38, %v691_v37 }
 0x1b7   : > { %v684_v8 = vadd.f32 %v925_v31, %v683_v63  ;;  %vm700_vm9 = vweird.f32 %v1474_v35  ;;  %vm690_vm1 = vcmp.eq.f32.partialorder %v689_v47, 8.507059e+37  ;;  %v707_v42 = vor.u32 1.1754944e-38, %v706_v55 }
 0x1b8   : > { %v699_v41 = vadd.f32 %v927_v26, %v698_v4  ;;  %vm702_vm2 = vmor %vm700_vm9, %vm701_vm7  ;;  %928 = vrcp.f32 %v618_v43  ;;  %vm705_vm3 = vcmp.eq.f32.partialorder %v704_v22, 8.507059e+37  ;;  %v721_v58 = vand.u32 2147483648, %v618_v43 }
 0x1b9   : > { %v688_v29 = vsel %vm687_vm0, %v925_v31, %v684_v8  ;;  %930 = vrcp.f32 %v619_v0  ;;  %v719_v24 = vand.u32 2147483647, %v618_v43  ;;  %v734_v51 = vand.u32 2147483647, %v619_v0 }
 0x1ba   : > { %v693_v44 = vsel %vm690_vm1, %v692_v27, %v688_v29  ;;  %v703_v45 = vsel %vm702_vm2, %v927_v26, %v699_v41  ;;  %vm715_vm10 = vweird.f32 %v618_v43  ;;  %v722_v10 = vor.u32 1.1754944e-38, %v721_v58 }
 0x1bb   : > { %v694_v46 = vmul.f32 %v693_v44, %v1164_v5  ;;  %v708_v57 = vsel %vm705_vm3, %v707_v42, %v703_v45  ;;  %v736_v5 = vand.u32 2147483648, %v619_v0  ;;  %vm730_vm13 = vweird.f32 %v619_v0 }
 0x1bc   : > { %v709_v17 = vmul.f32 %v708_v57, %v1180_v9  ;;  %vm720_vm14 = vcmp.eq.f32.partialorder %v719_v24, 8.507059e+37  ;;  %vm735_vm6 = vcmp.eq.f32.partialorder %v734_v51, 8.507059e+37 }
 0x1bd   : > { %746 = vst.msk [vmem:[%s1452_s29 + $0x20] sm:$0xff] %vm741_vm12, %v694_v46  ;;  %v737_v12 = vor.u32 1.1754944e-38, %v736_v5 }
 0x1be   : > { %747 = vst.msk [vmem:[%s1452_s29 + $0x28] sm:$0xff] %vm741_vm12, %v709_v17  ;;  %v929_v35 = vpop.eup %928 }
 0x1bf   : > { %v931_v18 = vpop.eup %930  ;;  %v711_v36 = vmul.f32 %v929_v35, %v618_v43  ;;  %vm716_vm4 = vweird.f32 %v929_v35 }
 0x1c0   : > { %v726_v30 = vmul.f32 %v931_v18, %v619_v0  ;;  %vm731_vm5 = vweird.f32 %v931_v18  ;;  %vm717_vm11 = vmor %vm715_vm10, %vm716_vm4 }
 0x1c1   : > { %v712_v32 = vsub.f32 1.0, %v711_v36  ;;  %vm732_vm15 = vmor %vm730_vm13, %vm731_vm5 }
 0x1c2   : > { %v727_v28 = vsub.f32 1.0, %v726_v30 }
 0x1c3   : > { %v713_v59 = vmul.f32 %v929_v35, %v712_v32 }
 0x1c4   : > { %v728_v9 = vmul.f32 %v931_v18, %v727_v28 }
 0x1c5   : > { %v714_v3 = vadd.f32 %v929_v35, %v713_v59 }
 0x1c6   : > { %v729_v11 = vadd.f32 %v931_v18, %v728_v9 }
 0x1c7   : > { %v718_v38 = vsel %vm717_vm11, %v929_v35, %v714_v3 }
 0x1c8   : > { %v723_v15 = vsel %vm720_vm14, %v722_v10, %v718_v38  ;;  %v733_v16 = vsel %vm732_vm15, %v931_v18, %v729_v11 }
 0x1c9   : > { %v724_v19 = vmul.f32 %v723_v15, %v1194_v13  ;;  %v738_v20 = vsel %vm735_vm6, %v737_v12, %v733_v16 }
 0x1ca   : > { %v739_v21 = vmul.f32 %v738_v20, %v1197_v14 }
 0x1cb   : > { %748 = vst.msk [vmem:[%s1452_s29 + $0x30] sm:$0xff] %vm741_vm12, %v724_v19 }
 0x1cc   : > { %749 = vst.msk [vmem:[%s1452_s29 + $0x38] sm:$0xff] %vm741_vm12, %v739_v21 }
 0x1cd   : > { %989 = shalt.err (!%p986_p4)
}
 0x1ce   : > { %s1038_s21 = smov 128   ;;  %s1039_s17 = smov 8  }
 0x1cf   : > { %862 = dma.vmem_to_hbm [thread:$0]  (%p1100_p11), %s765_s10, 1024, %s767_s5, %s751_s11, %s1038_s21, %s1038_s21, %s1039_s17  }
 0x1d0 PF: > { %s781_s25 = sand.u32 1, %s1016_s6   ;;  %p1576_p7 = scmp.ge.s32.totalorder %s1028_s9, 2 }
 0x1d1   : > { %s782_s26 = scalar_lea.sflag [#allocation5], %s781_s25 }
 0x1d2   : > { %p869_p5 = pnand %p1576_p7, %p1104_p12 }
 0x1d4   : > { %p870_p8 = pneg %p869_p5 }
 0x1d6   : > { %1011 = dma.done.wait (%p870_p8), %s782_s26, 1024  }
 0x1d7   : > { %1013 = vsyncadd (%p870_p8), %s782_s26, 4294966272  ;;  %p14_p10 = scmp.ge.s32.totalorder %s1075_s12, 4   ;;  %s1577_s6 = smov %s1020_s7 }
 0x1d8   : > { %s1578_s7 = smov %s1024_s8  ;;  %s1579_s8 = smov %s1087_s15 }
 0x1d9   : > { %s1580_s9 = smov %s1075_s12  ;;  %16 = sbr.rel (!%p14_p10) target bundleno = 5 (0x5), region = 71 }
 0x1de   :  { %788 = vsyncpa [#allocation4], 1 }
 0x1df   :  { %790 = vsyncpa [#allocation4 + $0x1], 1 }
 0x1e0   :  { %791 = vsyncpa [#allocation5], 1 }
 0x1e1   :  { %793 = vsyncpa [#allocation5 + $0x1], 1 }

</bundles_post_ra>
